<compile_context>
chip_gen: v7x
topology: tpu7x:2x2x1
jax: 0.10.0
libtpu: 0.0.40
codegen_flags: <defaults>
</compile_context>

<pallas_src>
import functools

import jax
import jax.numpy as jnp
from jax import lax
from jax.experimental import pallas as pl
from jax.experimental.pallas import tpu as pltpu

_EPS = 1e-5


def _residual_kernel(x_ref, w1_ref, b1_ref, w2_ref, b2_ref, mask_ref, *rest,
                     cin, cout, taps1, deltas2, sc_tap, compute_dtype):
    """One batch element per grid step.

    x_ref   : (1, P*Cin, S)  zero-padded input plane(s), spatial flat on lanes
    w1_ref  : (Cout, 9*Cin)  conv1 weight with bn1 scale folded in
    b1_ref  : (Cout, 1)      folded conv1-bias/bn1 bias
    w2_ref  : (Cout, 9*Cout) conv2 weight with bn2 scale folded in
    b2_ref  : (Cout, 1)      folded conv2-bias/bn2 bias
    mask_ref: (1, S)         1.0 on the valid Hout x Wout interior, 0 on border
    rest    : (ws_ref, bs_ref, o_ref) for a projection shortcut, else (o_ref,)
    o_ref   : (1, Cout, S)   output in the same padded-flat spatial layout
    """
    if sc_tap is None:
        (o_ref,) = rest
    else:
        ws_ref, bs_ref, o_ref = rest

    x = x_ref[0]                       # (P*Cin, S) float32
    mask = mask_ref[...]               # (1, S)

    def tap(src, plane, delta, nch):
        # out[:, q] = plane[:, q + delta]; wrap-around only touches border
        # lanes, which are masked (y1) or discarded (final output).
        piece = src[plane * nch:(plane + 1) * nch, :]
        if delta != 0:
            piece = jnp.roll(piece, -delta, axis=-1)
        return piece

    # ---- conv1 + folded bn1 + relu : single K = 9*Cin matmul -----------------
    patches1 = jnp.concatenate([tap(x, p, d, cin) for p, d in taps1], axis=0)
    z1 = jnp.dot(w1_ref[...], patches1.astype(compute_dtype),
                 preferred_element_type=jnp.float32)           # (Cout, S)
    # mask zeroes the 1-pixel border so it acts as conv2's zero padding
    y1 = jnp.maximum(z1 + b1_ref[...], 0.0) * mask

    # ---- conv2 + folded bn2 : single K = 9*Cout matmul -----------------------
    patches2 = jnp.concatenate([tap(y1, 0, d, cout) for d in deltas2], axis=0)
    z2 = jnp.dot(w2_ref[...], patches2.astype(compute_dtype),
                 preferred_element_type=jnp.float32) + b2_ref[...]

    # ---- shortcut -------------------------------------------------------------
    if sc_tap is None:                      # identity (stride 1, Cin == Cout)
        sc = x
    else:                                   # 1x1 conv, stride s, with bias
        plane, delta = sc_tap
        xs = tap(x, plane, delta, cin)
        sc = jnp.dot(ws_ref[...], xs.astype(compute_dtype),
                     preferred_element_type=jnp.float32) + bs_ref[...]

    o_ref[...] = (z2 + sc)[None].astype(o_ref.dtype)


def residual_pallas(x_nchw, p, stride, compute_dtype=jnp.float32):
    """x_nchw: (N, Cin, H, W) float32 -> (N, Cout, Hout, Wout) float32.

    compute_dtype=jnp.bfloat16 feeds the bf16-native MXU on v6e/v7x (f32
    accumulation kept); the default float32 matches PyTorch eval numerics.
    """
    N, Cin, H, W = x_nchw.shape
    Cout = p["w1"].shape[0]
    s = stride
    Hout = (H - 1) // s + 1
    Wout = (W - 1) // s + 1
    Hp, Wp = Hout + 2, Wout + 2
    S = Hp * Wp
    has_proj = p["ws"] is not None

    x = x_nchw.astype(jnp.float32)
    if s == 1:
        # single zero-padded plane; a 3x3 tap is the lane shift (kh-1)*Wp+(kw-1)
        planes = jnp.pad(x, ((0, 0), (0, 0), (1, 1), (1, 1))).reshape(N, Cin, S)
        nplanes = 1
        taps1 = [(0, (kh - 1) * Wp + (kw - 1))
                 for kh in range(3) for kw in range(3)]
        sc_tap = (0, 0) if has_proj else None
    elif s == 2:
        # 4-phase space-to-depth of the padded input: every stride-2 tap becomes
        # a unit-stride lane shift within one of the 4 phase planes.
        xp = jnp.pad(x, ((0, 0), (0, 0),
                         (1, 2 * Hout + 3 - H), (1, 2 * Wout + 3 - W)))
        phases = [xp[:, :, a::2, b::2] for a in range(2) for b in range(2)]
        planes = jnp.concatenate(phases, axis=1).reshape(N, 4 * Cin, S)
        nplanes = 4
        taps1 = [(2 * (kh % 2) + (kw % 2),
                  (kh // 2 - 1) * Wp + (kw // 2 - 1))
                 for kh in range(3) for kw in range(3)]
        sc_tap = (3, -(Wp + 1))          # stride != 1 always has a projection
    else:
        raise NotImplementedError("stride must be 1 or 2")
    deltas2 = [(kh - 1) * Wp + (kw - 1) for kh in range(3) for kw in range(3)]

    # Fold eval-mode BN (and conv bias) into per-channel weight scale + bias.
    sc1 = p["g1"] / jnp.sqrt(p["v1"] + _EPS)
    w1f = jnp.transpose(sc1[:, None, None, None] * p["w1"],
                        (0, 2, 3, 1)).reshape(Cout, 9 * Cin)
    b1f = (p["be1"] + sc1 * (p["b1"] - p["m1"])).reshape(Cout, 1).astype(jnp.float32)
    sc2 = p["g2"] / jnp.sqrt(p["v2"] + _EPS)
    w2f = jnp.transpose(sc2[:, None, None, None] * p["w2"],
                        (0, 2, 3, 1)).reshape(Cout, 9 * Cout)
    b2f = (p["be2"] + sc2 * (p["b2"] - p["m2"])).reshape(Cout, 1).astype(jnp.float32)

    mask = jnp.zeros((Hp, Wp), jnp.float32).at[1:Hout + 1, 1:Wout + 1].set(1.0)
    mask = mask.reshape(1, S)

    args = [planes, w1f.astype(compute_dtype), b1f,
            w2f.astype(compute_dtype), b2f, mask]
    in_specs = [
        pl.BlockSpec((1, nplanes * Cin, S), lambda n: (n, 0, 0)),
        pl.BlockSpec((Cout, 9 * Cin), lambda n: (0, 0)),
        pl.BlockSpec((Cout, 1), lambda n: (0, 0)),
        pl.BlockSpec((Cout, 9 * Cout), lambda n: (0, 0)),
        pl.BlockSpec((Cout, 1), lambda n: (0, 0)),
        pl.BlockSpec((1, S), lambda n: (0, 0)),
    ]
    if has_proj:
        args += [p["ws"][:, :, 0, 0].astype(compute_dtype),
                 p["bs"].reshape(Cout, 1).astype(jnp.float32)]
        in_specs += [pl.BlockSpec((Cout, Cin), lambda n: (0, 0)),
                     pl.BlockSpec((Cout, 1), lambda n: (0, 0))]

    kernel = functools.partial(
        _residual_kernel, cin=Cin, cout=Cout, taps1=taps1, deltas2=deltas2,
        sc_tap=sc_tap, compute_dtype=compute_dtype)

    out_flat = pl.pallas_call(
        kernel,
        out_shape=jax.ShapeDtypeStruct((N, Cout, S), jnp.float32),
        grid=(N,),
        in_specs=in_specs,
        out_specs=pl.BlockSpec((1, Cout, S), lambda n: (n, 0, 0)),
        compiler_params=pltpu.CompilerParams(dimension_semantics=("parallel",)),
    )(*args)

    # padded-flat -> dense NCHW: free metadata reshape + cheap XLA slice,
    # no transposes required.
    return out_flat.reshape(N, Cout, Hp, Wp)[:, :, 1:Hout + 1, 1:Wout + 1]


# -------------------------- pure-JAX reference (NCHW) --------------------------
def _conv_ref(x, w, b, s, pad):
    y = lax.conv_general_dilated(x, w, window_strides=(s, s),
                                 padding=((pad, pad), (pad, pad)),
                                 dimension_numbers=("NCHW", "OIHW", "NCHW"))
    return y + b[None, :, None, None]


def _bn_ref(x, g, be, m, v):
    return (g[None, :, None, None] * (x - m[None, :, None, None])
            / jnp.sqrt(v[None, :, None, None] + _EPS) + be[None, :, None, None])


def residual_ref(x, p, stride):
    y = jax.nn.relu(_bn_ref(_conv_ref(x, p["w1"], p["b1"], stride, 1),
                            p["g1"], p["be1"], p["m1"], p["v1"]))
    y = _bn_ref(_conv_ref(y, p["w2"], p["b2"], 1, 1),
                p["g2"], p["be2"], p["m2"], p["v2"])
    if p["ws"] is not None:
        sc = _conv_ref(x, p["ws"], p["bs"], stride, 0)
    else:
        sc = x
    return y + sc


# ------------------------------ deterministic init ------------------------------
def init_params(key, cin, cout, stride):
    ks = jax.random.split(key, 12)
    p = {
        "w1": jax.random.normal(ks[0], (cout, cin, 3, 3), jnp.float32) * 0.1,
        "b1": jax.random.normal(ks[1], (cout,), jnp.float32) * 0.1,
        "g1": 1.0 + 0.1 * jnp.arange(cout, dtype=jnp.float32),
        "be1": 0.05 * jnp.arange(cout, dtype=jnp.float32),
        "m1": jax.random.normal(ks[2], (cout,), jnp.float32) * 0.1,
        "v1": 1.0 + jax.random.uniform(ks[3], (cout,), jnp.float32),
        "w2": jax.random.normal(ks[4], (cout, cout, 3, 3), jnp.float32) * 0.1,
        "b2": jax.random.normal(ks[5], (cout,), jnp.float32) * 0.1,
        "g2": 1.0 - 0.05 * jnp.arange(cout, dtype=jnp.float32),
        "be2": -0.03 * jnp.arange(cout, dtype=jnp.float32),
        "m2": jax.random.normal(ks[6], (cout,), jnp.float32) * 0.1,
        "v2": 1.0 + jax.random.uniform(ks[7], (cout,), jnp.float32),
    }
    if stride != 1 or cin != cout:
        p["ws"] = jax.random.normal(ks[8], (cout, cin, 1, 1), jnp.float32) * 0.2
        p["bs"] = jax.random.normal(ks[9], (cout,), jnp.float32) * 0.1
    else:
        p["ws"] = None
        p["bs"] = None
    return p


if __name__ == "__main__":
    key = jax.random.PRNGKey(0)
    kx1, kx2, kp1, kp2 = jax.random.split(key, 4)

    # Config 1: projection shortcut (stride=2, 4 -> 8 channels), x: (2, 4, 16, 16)
    x1 = jax.random.normal(kx1, (2, 4, 16, 16), jnp.float32)
    p1 = init_params(kp1, 4, 8, 2)
    out1 = residual_pallas(x1, p1, 2)
    jax.block_until_ready(out1)
    ref1 = residual_ref(x1, p1, 2)
    assert out1.shape == (2, 8, 8, 8), out1.shape
    assert jnp.allclose(out1, ref1, atol=1e-4, rtol=1e-4), \
        float(jnp.max(jnp.abs(out1 - ref1)))

    # Config 2: identity shortcut (stride=1, 8 -> 8 channels), x: (2, 8, 16, 16)
    x2 = jax.random.normal(kx2, (2, 8, 16, 16), jnp.float32)
    p2 = init_params(kp2, 8, 8, 1)
    out2 = residual_pallas(x2, p2, 1)
    jax.block_until_ready(out2)
    ref2 = residual_ref(x2, p2, 1)
    assert out2.shape == (2, 8, 16, 16), out2.shape
    assert jnp.allclose(out2, ref2, atol=1e-4, rtol=1e-4), \
        float(jnp.max(jnp.abs(out2 - ref2)))

    # bf16 MXU-operand path (v6e/v7x optimization) -- loose sanity tolerance only,
    # since bf16 intentionally changes numerics relative to the f32 reference.
    out1_bf16 = residual_pallas(x1, p1, 2, compute_dtype=jnp.bfloat16)
    jax.block_until_ready(out1_bf16)
    assert float(jnp.max(jnp.abs(out1_bf16 - ref1))) < 0.25

    print("KERNEL_OK")
</pallas_src>

<mosaic_0001>
module attributes {stable_mosaic.version = 11 : i64} {
  func.func @_residual_kernel(%arg0: i32, %arg1: memref<1x16x100xf32, #tpu.memory_space<vmem>>, %arg2: memref<8x36xf32, #tpu.memory_space<vmem>>, %arg3: memref<8x1xf32, #tpu.memory_space<vmem>>, %arg4: memref<8x72xf32, #tpu.memory_space<vmem>>, %arg5: memref<8x1xf32, #tpu.memory_space<vmem>>, %arg6: memref<1x100xf32, #tpu.memory_space<vmem>>, %arg7: memref<8x4xf32, #tpu.memory_space<vmem>>, %arg8: memref<8x1xf32, #tpu.memory_space<vmem>>, %arg9: memref<1x8x100xf32, #tpu.memory_space<vmem>>) attributes {dimension_semantics = [#tpu.dimension_semantics<parallel>], iteration_bounds = array<i64: 2>, scalar_prefetch = 0 : i64, scratch_operands = 0 : i64, tpu.core_type = #tpu.core_type<tc>, window_params = [{transform_indices = @transform_0, window_bounds = array<i64: 1, 16, 100>}, {pipeline_mode = #tpu.pipeline_mode<synchronous>, transform_indices = @transform_1, window_bounds = array<i64: 8, 36>}, {pipeline_mode = #tpu.pipeline_mode<synchronous>, transform_indices = @transform_2, window_bounds = array<i64: 8, 1>}, {pipeline_mode = #tpu.pipeline_mode<synchronous>, transform_indices = @transform_3, window_bounds = array<i64: 8, 72>}, {pipeline_mode = #tpu.pipeline_mode<synchronous>, transform_indices = @transform_4, window_bounds = array<i64: 8, 1>}, {pipeline_mode = #tpu.pipeline_mode<synchronous>, transform_indices = @transform_5, window_bounds = array<i64: 1, 100>}, {pipeline_mode = #tpu.pipeline_mode<synchronous>, transform_indices = @transform_6, window_bounds = array<i64: 8, 4>}, {pipeline_mode = #tpu.pipeline_mode<synchronous>, transform_indices = @transform_7, window_bounds = array<i64: 8, 1>}, {transform_indices = @transform_8, window_bounds = array<i64: 1, 8, 100>}]} {
    %c0 = arith.constant 0 : index
    %c0_0 = arith.constant 0 : index
    %c0_1 = arith.constant 0 : index
    %0 = vector.load %arg1[%c0, %c0_0, %c0_1] : memref<1x16x100xf32, #tpu.memory_space<vmem>>, vector<1x16x100xf32>
    %1 = vector.shape_cast %0 : vector<1x16x100xf32> to vector<16x100xf32>
    %c0_2 = arith.constant 0 : index
    %c0_3 = arith.constant 0 : index
    %2 = vector.load %arg6[%c0_2, %c0_3] : memref<1x100xf32, #tpu.memory_space<vmem>>, vector<1x100xf32>
    %3 = vector.extract_strided_slice %1 {offsets = [0, 0], sizes = [4, 100], strides = [1, 1]} : vector<16x100xf32> to vector<4x100xf32>
    %4 = vector.extract_strided_slice %3 {offsets = [0, 89], sizes = [4, 11], strides = [1, 1]} : vector<4x100xf32> to vector<4x11xf32>
    %5 = vector.extract_strided_slice %3 {offsets = [0, 0], sizes = [4, 89], strides = [1, 1]} : vector<4x100xf32> to vector<4x89xf32>
    %6 = tpu.concatenate %4, %5 in 1 : vector<4x11xf32>, vector<4x89xf32> -> vector<4x100xf32>
    %7 = vector.extract_strided_slice %1 {offsets = [4, 0], sizes = [4, 100], strides = [1, 1]} : vector<16x100xf32> to vector<4x100xf32>
    %8 = vector.extract_strided_slice %7 {offsets = [0, 89], sizes = [4, 11], strides = [1, 1]} : vector<4x100xf32> to vector<4x11xf32>
    %9 = vector.extract_strided_slice %7 {offsets = [0, 0], sizes = [4, 89], strides = [1, 1]} : vector<4x100xf32> to vector<4x89xf32>
    %10 = tpu.concatenate %8, %9 in 1 : vector<4x11xf32>, vector<4x89xf32> -> vector<4x100xf32>
    %11 = vector.extract_strided_slice %1 {offsets = [0, 0], sizes = [4, 100], strides = [1, 1]} : vector<16x100xf32> to vector<4x100xf32>
    %12 = vector.extract_strided_slice %11 {offsets = [0, 90], sizes = [4, 10], strides = [1, 1]} : vector<4x100xf32> to vector<4x10xf32>
    %13 = vector.extract_strided_slice %11 {offsets = [0, 0], sizes = [4, 90], strides = [1, 1]} : vector<4x100xf32> to vector<4x90xf32>
    %14 = tpu.concatenate %12, %13 in 1 : vector<4x10xf32>, vector<4x90xf32> -> vector<4x100xf32>
    %15 = vector.extract_strided_slice %1 {offsets = [8, 0], sizes = [4, 100], strides = [1, 1]} : vector<16x100xf32> to vector<4x100xf32>
    %16 = vector.extract_strided_slice %15 {offsets = [0, 89], sizes = [4, 11], strides = [1, 1]} : vector<4x100xf32> to vector<4x11xf32>
    %17 = vector.extract_strided_slice %15 {offsets = [0, 0], sizes = [4, 89], strides = [1, 1]} : vector<4x100xf32> to vector<4x89xf32>
    %18 = tpu.concatenate %16, %17 in 1 : vector<4x11xf32>, vector<4x89xf32> -> vector<4x100xf32>
    %19 = vector.extract_strided_slice %1 {offsets = [12, 0], sizes = [4, 100], strides = [1, 1]} : vector<16x100xf32> to vector<4x100xf32>
    %20 = vector.extract_strided_slice %19 {offsets = [0, 89], sizes = [4, 11], strides = [1, 1]} : vector<4x100xf32> to vector<4x11xf32>
    %21 = vector.extract_strided_slice %19 {offsets = [0, 0], sizes = [4, 89], strides = [1, 1]} : vector<4x100xf32> to vector<4x89xf32>
    %22 = tpu.concatenate %20, %21 in 1 : vector<4x11xf32>, vector<4x89xf32> -> vector<4x100xf32>
    %23 = vector.extract_strided_slice %1 {offsets = [8, 0], sizes = [4, 100], strides = [1, 1]} : vector<16x100xf32> to vector<4x100xf32>
    %24 = vector.extract_strided_slice %23 {offsets = [0, 90], sizes = [4, 10], strides = [1, 1]} : vector<4x100xf32> to vector<4x10xf32>
    %25 = vector.extract_strided_slice %23 {offsets = [0, 0], sizes = [4, 90], strides = [1, 1]} : vector<4x100xf32> to vector<4x90xf32>
    %26 = tpu.concatenate %24, %25 in 1 : vector<4x10xf32>, vector<4x90xf32> -> vector<4x100xf32>
    %27 = vector.extract_strided_slice %1 {offsets = [0, 0], sizes = [4, 100], strides = [1, 1]} : vector<16x100xf32> to vector<4x100xf32>
    %28 = vector.extract_strided_slice %27 {offsets = [0, 99], sizes = [4, 1], strides = [1, 1]} : vector<4x100xf32> to vector<4x1xf32>
    %29 = vector.extract_strided_slice %27 {offsets = [0, 0], sizes = [4, 99], strides = [1, 1]} : vector<4x100xf32> to vector<4x99xf32>
    %30 = tpu.concatenate %28, %29 in 1 : vector<4x1xf32>, vector<4x99xf32> -> vector<4x100xf32>
    %31 = vector.extract_strided_slice %1 {offsets = [4, 0], sizes = [4, 100], strides = [1, 1]} : vector<16x100xf32> to vector<4x100xf32>
    %32 = vector.extract_strided_slice %31 {offsets = [0, 99], sizes = [4, 1], strides = [1, 1]} : vector<4x100xf32> to vector<4x1xf32>
    %33 = vector.extract_strided_slice %31 {offsets = [0, 0], sizes = [4, 99], strides = [1, 1]} : vector<4x100xf32> to vector<4x99xf32>
    %34 = tpu.concatenate %32, %33 in 1 : vector<4x1xf32>, vector<4x99xf32> -> vector<4x100xf32>
    %35 = vector.extract_strided_slice %1 {offsets = [0, 0], sizes = [4, 100], strides = [1, 1]} : vector<16x100xf32> to vector<4x100xf32>
    %36 = tpu.concatenate %6, %10, %14, %18, %22, %26, %30, %34, %35 in 0 : vector<4x100xf32>, vector<4x100xf32>, vector<4x100xf32>, vector<4x100xf32>, vector<4x100xf32>, vector<4x100xf32>, vector<4x100xf32>, vector<4x100xf32>, vector<4x100xf32> -> vector<36x100xf32>
    %c0_4 = arith.constant 0 : index
    %c0_5 = arith.constant 0 : index
    %37 = vector.load %arg2[%c0_4, %c0_5] : memref<8x36xf32, #tpu.memory_space<vmem>>, vector<8x36xf32>
    %cst = arith.constant dense<0.000000e+00> : vector<8x100xf32>
    %38 = tpu.matmul %37, %36, %cst {dimension_numbers = #tpu.dot_dimension_numbers<[1], [0], [0], [1], [0, 0, 1, 1], [], []>} : vector<8x36xf32>, vector<36x100xf32>, vector<8x100xf32> -> vector<8x100xf32>
    %c0_6 = arith.constant 0 : index
    %c0_7 = arith.constant 0 : index
    %39 = vector.load %arg3[%c0_6, %c0_7] : memref<8x1xf32, #tpu.memory_space<vmem>>, vector<8x1xf32>
    %40 = vector.broadcast %39 : vector<8x1xf32> to vector<8x100xf32>
    %41 = arith.addf %38, %40 : vector<8x100xf32>
    %cst_8 = arith.constant 0.000000e+00 : f32
    %42 = vector.broadcast %cst_8 : f32 to vector<8x100xf32>
    %43 = arith.maximumf %41, %42 : vector<8x100xf32>
    %44 = vector.broadcast %2 : vector<1x100xf32> to vector<8x100xf32>
    %45 = arith.mulf %43, %44 : vector<8x100xf32>
    %46 = vector.extract_strided_slice %45 {offsets = [0, 89], sizes = [8, 11], strides = [1, 1]} : vector<8x100xf32> to vector<8x11xf32>
    %47 = vector.extract_strided_slice %45 {offsets = [0, 0], sizes = [8, 89], strides = [1, 1]} : vector<8x100xf32> to vector<8x89xf32>
    %48 = tpu.concatenate %46, %47 in 1 : vector<8x11xf32>, vector<8x89xf32> -> vector<8x100xf32>
    %49 = vector.extract_strided_slice %45 {offsets = [0, 90], sizes = [8, 10], strides = [1, 1]} : vector<8x100xf32> to vector<8x10xf32>
    %50 = vector.extract_strided_slice %45 {offsets = [0, 0], sizes = [8, 90], strides = [1, 1]} : vector<8x100xf32> to vector<8x90xf32>
    %51 = tpu.concatenate %49, %50 in 1 : vector<8x10xf32>, vector<8x90xf32> -> vector<8x100xf32>
    %52 = vector.extract_strided_slice %45 {offsets = [0, 91], sizes = [8, 9], strides = [1, 1]} : vector<8x100xf32> to vector<8x9xf32>
    %53 = vector.extract_strided_slice %45 {offsets = [0, 0], sizes = [8, 91], strides = [1, 1]} : vector<8x100xf32> to vector<8x91xf32>
    %54 = tpu.concatenate %52, %53 in 1 : vector<8x9xf32>, vector<8x91xf32> -> vector<8x100xf32>
    %55 = vector.extract_strided_slice %45 {offsets = [0, 99], sizes = [8, 1], strides = [1, 1]} : vector<8x100xf32> to vector<8x1xf32>
    %56 = vector.extract_strided_slice %45 {offsets = [0, 0], sizes = [8, 99], strides = [1, 1]} : vector<8x100xf32> to vector<8x99xf32>
    %57 = tpu.concatenate %55, %56 in 1 : vector<8x1xf32>, vector<8x99xf32> -> vector<8x100xf32>
    %58 = vector.extract_strided_slice %45 {offsets = [0, 1], sizes = [8, 99], strides = [1, 1]} : vector<8x100xf32> to vector<8x99xf32>
    %59 = vector.extract_strided_slice %45 {offsets = [0, 0], sizes = [8, 1], strides = [1, 1]} : vector<8x100xf32> to vector<8x1xf32>
    %60 = tpu.concatenate %58, %59 in 1 : vector<8x99xf32>, vector<8x1xf32> -> vector<8x100xf32>
    %61 = vector.extract_strided_slice %45 {offsets = [0, 9], sizes = [8, 91], strides = [1, 1]} : vector<8x100xf32> to vector<8x91xf32>
    %62 = vector.extract_strided_slice %45 {offsets = [0, 0], sizes = [8, 9], strides = [1, 1]} : vector<8x100xf32> to vector<8x9xf32>
    %63 = tpu.concatenate %61, %62 in 1 : vector<8x91xf32>, vector<8x9xf32> -> vector<8x100xf32>
    %64 = vector.extract_strided_slice %45 {offsets = [0, 10], sizes = [8, 90], strides = [1, 1]} : vector<8x100xf32> to vector<8x90xf32>
    %65 = vector.extract_strided_slice %45 {offsets = [0, 0], sizes = [8, 10], strides = [1, 1]} : vector<8x100xf32> to vector<8x10xf32>
    %66 = tpu.concatenate %64, %65 in 1 : vector<8x90xf32>, vector<8x10xf32> -> vector<8x100xf32>
    %67 = vector.extract_strided_slice %45 {offsets = [0, 11], sizes = [8, 89], strides = [1, 1]} : vector<8x100xf32> to vector<8x89xf32>
    %68 = vector.extract_strided_slice %45 {offsets = [0, 0], sizes = [8, 11], strides = [1, 1]} : vector<8x100xf32> to vector<8x11xf32>
    %69 = tpu.concatenate %67, %68 in 1 : vector<8x89xf32>, vector<8x11xf32> -> vector<8x100xf32>
    %70 = tpu.concatenate %48, %51, %54, %57, %45, %60, %63, %66, %69 in 0 : vector<8x100xf32>, vector<8x100xf32>, vector<8x100xf32>, vector<8x100xf32>, vector<8x100xf32>, vector<8x100xf32>, vector<8x100xf32>, vector<8x100xf32>, vector<8x100xf32> -> vector<72x100xf32>
    %c0_9 = arith.constant 0 : index
    %c0_10 = arith.constant 0 : index
    %71 = vector.load %arg4[%c0_9, %c0_10] : memref<8x72xf32, #tpu.memory_space<vmem>>, vector<8x72xf32>
    %cst_11 = arith.constant dense<0.000000e+00> : vector<8x100xf32>
    %72 = tpu.matmul %71, %70, %cst_11 {dimension_numbers = #tpu.dot_dimension_numbers<[1], [0], [0], [1], [0, 0, 1, 1], [], []>} : vector<8x72xf32>, vector<72x100xf32>, vector<8x100xf32> -> vector<8x100xf32>
    %c0_12 = arith.constant 0 : index
    %c0_13 = arith.constant 0 : index
    %73 = vector.load %arg5[%c0_12, %c0_13] : memref<8x1xf32, #tpu.memory_space<vmem>>, vector<8x1xf32>
    %74 = vector.broadcast %73 : vector<8x1xf32> to vector<8x100xf32>
    %75 = arith.addf %72, %74 : vector<8x100xf32>
    %76 = vector.extract_strided_slice %1 {offsets = [12, 0], sizes = [4, 100], strides = [1, 1]} : vector<16x100xf32> to vector<4x100xf32>
    %77 = vector.extract_strided_slice %76 {offsets = [0, 89], sizes = [4, 11], strides = [1, 1]} : vector<4x100xf32> to vector<4x11xf32>
    %78 = vector.extract_strided_slice %76 {offsets = [0, 0], sizes = [4, 89], strides = [1, 1]} : vector<4x100xf32> to vector<4x89xf32>
    %79 = tpu.concatenate %77, %78 in 1 : vector<4x11xf32>, vector<4x89xf32> -> vector<4x100xf32>
    %c0_14 = arith.constant 0 : index
    %c0_15 = arith.constant 0 : index
    %80 = vector.load %arg7[%c0_14, %c0_15] : memref<8x4xf32, #tpu.memory_space<vmem>>, vector<8x4xf32>
    %cst_16 = arith.constant dense<0.000000e+00> : vector<8x100xf32>
    %81 = tpu.matmul %80, %79, %cst_16 {dimension_numbers = #tpu.dot_dimension_numbers<[1], [0], [0], [1], [0, 0, 1, 1], [], []>} : vector<8x4xf32>, vector<4x100xf32>, vector<8x100xf32> -> vector<8x100xf32>
    %c0_17 = arith.constant 0 : index
    %c0_18 = arith.constant 0 : index
    %82 = vector.load %arg8[%c0_17, %c0_18] : memref<8x1xf32, #tpu.memory_space<vmem>>, vector<8x1xf32>
    %83 = vector.broadcast %82 : vector<8x1xf32> to vector<8x100xf32>
    %84 = arith.addf %81, %83 : vector<8x100xf32>
    %85 = arith.addf %75, %84 : vector<8x100xf32>
    %86 = vector.shape_cast %85 : vector<8x100xf32> to vector<1x8x100xf32>
    %c0_19 = arith.constant 0 : index
    %c0_20 = arith.constant 0 : index
    %c0_21 = arith.constant 0 : index
    %87 = vector.load %arg9[%c0_19, %c0_20, %c0_21] : memref<1x8x100xf32, #tpu.memory_space<vmem>>, vector<1x8x100xf32>
    tpu.vector_store %arg9[%c0_19, %c0_20, %c0_21], %86 {strides = array<i32>} : memref<1x8x100xf32, #tpu.memory_space<vmem>>, vector<1x8x100xf32>,
    return
  }
  func.func @transform_0(%arg0: i32) -> (i32, i32, i32) {
    %c0_i32 = arith.constant 0 : i32
    %c0_i32_0 = arith.constant 0 : i32
    %c0_i32_1 = arith.constant 0 : i32
    return %arg0, %c0_i32, %c0_i32_0 : i32, i32, i32
  }
  func.func @transform_1(%arg0: i32) -> (i32, i32) {
    %c0_i32 = arith.constant 0 : i32
    %c0_i32_0 = arith.constant 0 : i32
    %c0_i32_1 = arith.constant 0 : i32
    return %c0_i32, %c0_i32_0 : i32, i32
  }
  func.func @transform_2(%arg0: i32) -> (i32, i32) {
    %c0_i32 = arith.constant 0 : i32
    %c0_i32_0 = arith.constant 0 : i32
    %c0_i32_1 = arith.constant 0 : i32
    return %c0_i32, %c0_i32_0 : i32, i32
  }
  func.func @transform_3(%arg0: i32) -> (i32, i32) {
    %c0_i32 = arith.constant 0 : i32
    %c0_i32_0 = arith.constant 0 : i32
    %c0_i32_1 = arith.constant 0 : i32
    return %c0_i32, %c0_i32_0 : i32, i32
  }
  func.func @transform_4(%arg0: i32) -> (i32, i32) {
    %c0_i32 = arith.constant 0 : i32
    %c0_i32_0 = arith.constant 0 : i32
    %c0_i32_1 = arith.constant 0 : i32
    return %c0_i32, %c0_i32_0 : i32, i32
  }
  func.func @transform_5(%arg0: i32) -> (i32, i32) {
    %c0_i32 = arith.constant 0 : i32
    %c0_i32_0 = arith.constant 0 : i32
    %c0_i32_1 = arith.constant 0 : i32
    return %c0_i32, %c0_i32_0 : i32, i32
  }
  func.func @transform_6(%arg0: i32) -> (i32, i32) {
    %c0_i32 = arith.constant 0 : i32
    %c0_i32_0 = arith.constant 0 : i32
    %c0_i32_1 = arith.constant 0 : i32
    return %c0_i32, %c0_i32_0 : i32, i32
  }
  func.func @transform_7(%arg0: i32) -> (i32, i32) {
    %c0_i32 = arith.constant 0 : i32
    %c0_i32_0 = arith.constant 0 : i32
    %c0_i32_1 = arith.constant 0 : i32
    return %c0_i32, %c0_i32_0 : i32, i32
  }
  func.func @transform_8(%arg0: i32) -> (i32, i32, i32) {
    %c0_i32 = arith.constant 0 : i32
    %c0_i32_0 = arith.constant 0 : i32
    %c0_i32_1 = arith.constant 0 : i32
    return %arg0, %c0_i32, %c0_i32_0 : i32, i32, i32
  }
}

</mosaic_0001>

<bundles_post_ra>
// kernel: tpu_custom_call.1
= control target key start
LH: loop header
LB: loop body
LE: loop exit
PB: predicated region body
PF: predicated region fallthrough
CT: control target
= control target key end

     0   :  { %13 = vsyncpa [#allocation3], 0  ;;  %s1208_s0 = inlined_call_operand.vmem [shape: f32[2,16,100], index: 0, kind: input, shape index: {}]   ;;  %s1209_s1 = inlined_call_operand.vmem [shape: f32[8,36], index: 1, kind: input, shape index: {}]   ;;  %s1210_s2 = inlined_call_operand.vmem [shape: f32[8,1], index: 2, kind: input, shape index: {}]   ;;  %s1211_s3 = inlined_call_operand.vmem [shape: f32[8,72], index: 3, kind: input, shape index: {}]   ;;  %s1212_s4 = inlined_call_operand.vmem [shape: f32[8,1], index: 4, kind: input, shape index: {}]   ;;  %s1213_s5 = inlined_call_operand.vmem [shape: f32[1,100], index: 5, kind: input, shape index: {}]   ;;  %s1214_s6 = inlined_call_operand.vmem [shape: f32[8,4], index: 6, kind: input, shape index: {}]   ;;  %s1215_s7 = inlined_call_operand.vmem [shape: f32[8,1], index: 7, kind: input, shape index: {}]   ;;  %s1216_s8 = inlined_call_operand.hbm [shape: f32[2,8,100], index: 8, kind: output, shape index: {}]  }
   0x1   :  { %15 = vsyncpa [#allocation3 + $0x1], 0  ;;  %s1046_s27 = smov 0   ;;  %s1048_s28 = smov 0  }
   0x2   :  { %s1050_s29 = smov 0   ;;  %s1052_s30 = smov 0  }
   0x3 LB: > { %s1067_s9 = sadd.s32 4294967295, %s978_s30   ;;  %s749_s10 = sadd.s32 4294967294, %s978_s30   ;;  %s978_s30 = sphi %s1052_s30, %s1222_s30   ;;  %s974_s29 = sphi %s1050_s29, %s1221_s29   ;;  %s970_s28 = sphi %s1048_s28, %s1220_s28   ;;  %s966_s27 = sphi %s1046_s27, %s1219_s27  }
   0x4   : > { %s1071_s11 = sadd.s32 1, %s978_s30   ;;  %s201_s12 = sadd.s32 1, %s974_s29 }
   0x5   : > { %s198_s13 = ssub.s32 %s978_s30, %s1071_s11  ;;  %p211_p0 = scmp.ne.s32.totalorder %s974_s29, %s970_s28 }
   0x6   : > { %p199_p1 = scmp.eq.s32.totalorder %s198_s13, 0  ;;  %p212_p2 = scmp.eq.s32.totalorder %s1067_s9, 1 }
   0x7   : > { %p217_p3 = scmp.ne.s32.totalorder %s970_s28, %s966_s27  ;;  %p218_p4 = scmp.eq.s32.totalorder %s749_s10, 1 }
   0x8   : > { %s1082_s14 = scalar_select %p199_p1, %s974_s29, %s201_s12  }
   0x9   : > { %p1084_p5 = por %p212_p2, %p211_p0  ;;  %p1088_p6 = por %p218_p4, %p217_p3 }
   0xa   : > { %p752_p7 = scmp.ge.s32.totalorder %s978_s30, 1  ;;  %p265_p8 = scmp.lt.s32.totalorder %s978_s30, 3 }
   0xc   : > { %p266_p9 = pnand %p752_p7, %p265_p8 }
   0xd   : > { %p299_p10 = scmp.lt.s32.totalorder (!%p266_p9), %s1067_s9, 1  ;;  %v980_v0 = vmov (!%p266_p9), 0.0|0.0   ;;  %s981_s22 = smov (!%p266_p9), 39   ;;  %vm985_vm0 = vmmov (!%p266_p9), 0   ;;  %v986_v4 = vmov (!%p266_p9), 0.0   ;;  %v987_v5 = vmov (!%p266_p9), 0  }
   0xe   : > { %269 = sbr.rel (%p266_p9) target bundleno = 764 (0x2fc), region = 52  ;;  %824 = vmatprep.subr.bf16.mxu0 (!%p266_p9), %v980_v0  ;;  %830 = vmatprep.subr.bf16.mxu1 (!%p266_p9), %v980_v0  ;;  %s982_s23 = smov (!%p266_p9), 38   ;;  %v357_v6 = vld [vmem:[%s1210_s2] sm:$0xff] (!%p266_p9)  ;;  %vm314_vm1 = vcmask (!%p266_p9), 89088   ;;  %vm322_vm2 = vcmask (!%p266_p9), 80896   ;;  %vm353_vm3 = vcmask (!%p266_p9), 1043456  }
   0xf   : > { %s983_s24 = smov (!%p266_p9), 11   ;;  %s984_s25 = smov (!%p266_p9), 10   ;;  %795 = vmatprep.mubr.msk.f32.mxu0 (!%p266_p9), %vm985_vm0, %v986_v4  ;;  %816 = vmatprep.mubr.msk.f32.mxu1 (!%p266_p9), %vm985_vm0, %v986_v4  ;;  %vm345_vm4 = vcmask (!%p266_p9), 7168   ;;  %v356_v30 = vld [vmem:[%s1209_s1] sm:$0xff] (!%p266_p9)  ;;  %vm363_vm5 = vcmask (!%p266_p9), 293888   ;;  %vm597_vm6 = vcmask (!%p266_p9), 31744  }
  0x10   : > { %914 = vset.pattern.permute.xlu0 (!%p266_p9), %v987_v5  ;;  %915 = vset.pattern.permute.xlu1 (!%p266_p9), %v987_v5  ;;  %s988_s26 = smov (!%p266_p9), 29   ;;  %s989_s13 = smov (!%p266_p9), 1   ;;  %v758_v35 = vld [vmem:[%s1213_s5] ss:$0 sm:$0xff] (!%p266_p9)  ;;  %vm468_vm7 = vcmask (!%p266_p9), 72704   ;;  %vm483_vm8 = vcmask (!%p266_p9), 809984  }
  0x11   : > { %s991_s10 = smov (!%p266_p9), 127   ;;  %s992_s12 = smov (!%p266_p9), 9   ;;  %v590_v38 = vld [vmem:[%s1214_s6] sm:$0xff] (!%p266_p9)  ;;  %vm491_vm9 = vcmask (!%p266_p9), 744448   ;;  %vm499_vm10 = vcmask (!%p266_p9), 736256   ;;  %vm507_vm11 = vcmask (!%p266_p9), 728064  }
  0x12   : > { %v510_v39 = vld [vmem:[%s1212_s4] sm:$0xff] (!%p266_p9)  ;;  %vm516_vm12 = vcmask (!%p266_p9), 588800   ;;  %s763_s19 = sshll.u32 (!%p266_p9), %s1067_s9, 7  ;;  %vm674_vm13 = vcmask (!%p266_p9), 818176  }
  0x13   : > { %v591_v40 = vld [vmem:[%s1215_s7] sm:$0xff] (!%p266_p9) }
  0x15   : > { %s300_s17 = scalar_select %p299_p10, %s1067_s9, 1 }
  0x16   : > { %s1000_s9 = smov [#allocation2]  }
  0x17   : > { %s766_s18 = sshll.u32 %s300_s17, 4  ;;  %s993_s17 = smov 119  }
  0x18   : > { %s303_s21 = scalar_lea.vmem %s1208_s0, %s766_s18  ;;  %s994_s18 = smov 118  }
  0x19   : > { %v305_v1 = vld [vmem:[%s303_s21 + $0x8] sm:$0xff]  ;;  %v304_v2 = vld [vmem:[%s303_s21] sm:$0xff]  ;;  %s990_s21 = smov 37  }
  0x1a   : > { %325 = vrot.lane.b32.xlu0 %v305_v1, %s981_s22  ;;  %v904_v3 = vpack.i.bf16 %v305_v1, %v304_v2 }
  0x1c   : > { %905 = vrot.lane.b32.xlu1 %v904_v3, %s982_s23 }
  0x1e   : > { %328 = vrot.lane.b32.xlu0 %v305_v1, %s983_s24 }
  0x20   : > { %910 = vrot.lane.b32.xlu1 %v904_v3, %s984_s25 }
  0x22   : > { %308 = vrot.lane.b32.xlu0 %v304_v2, %s981_s22 }
  0x24   : > { %311 = vrot.lane.b32.xlu1 %v304_v2, %s983_s24 }
  0x26   : > { %339 = vrot.lane.b32.xlu0 %v304_v2, %s988_s26 }
  0x28   : > { %342 = vrot.lane.b32.xlu1 %v304_v2, %s989_s13 }
  0x2a   : > { %360 = vperm.xlu0 %914, %v357_v6   ;;  %v509_v6 = vld [vmem:[%s1211_s3] sm:$0xff] }
  0x8c   : > { %v326_v7 = vpop.permute.xlu0 %325 }
  0x8e   : > { %v906_v8 = vpop.permute.xlu1 %905 }
  0x8f   : > { %v908_v12 = vunpack.i.h.bf16 %v906_v8  ;;  %v907_v13 = vunpack.i.l.bf16 %v906_v8 }
  0x90   : > { %v329_v9 = vpop.permute.xlu0 %328 }
  0x91   : > { %v331_v10 = vsel %vm314_vm1, %v326_v7, %v329_v9 }
  0x92   : > { %v911_v11 = vpop.permute.xlu1 %910  ;;  %v348_v16 = vrot.slane %v331_v10, 4 }
  0x93   : > { %v913_v14 = vunpack.i.h.bf16 %v911_v11  ;;  %v912_v15 = vunpack.i.l.bf16 %v911_v11 }
  0x94   : > { %v309_v17 = vpop.permute.xlu0 %308 }
  0x95   : > { %v338_v18 = vsel %vm322_vm2, %v908_v12, %v913_v14  ;;  %v323_v19 = vsel %vm322_vm2, %v907_v13, %v912_v15 }
  0x96   : > { %v312_v20 = vpop.permute.xlu1 %311  ;;  %v354_v21 = vsel %vm353_vm3, %v323_v19, %v348_v16  ;;  %v351_v22 = vrot.slane %v338_v18, 4 }
  0x97   : > { %v315_v23 = vsel %vm314_vm1, %v309_v17, %v312_v20 }
  0x98   : > { %v340_v24 = vpop.permute.xlu0 %339  ;;  %v825_v25 = vpack.c.bf16 %v354_v21, %v315_v23  ;;  %v355_v28 = vsel %vm353_vm3, %v348_v16, %v351_v22 }
  0x9a   : > { %v343_v26 = vpop.permute.xlu1 %342  ;;  %826 = vmatpush3.bf16.msra.mxu0 %v825_v25 }
  0x9b   : > { %v346_v27 = vsel %vm345_vm4, %v340_v24, %v343_v26  ;;  %827 = vmatprep.subr.bf16.mxu0 %v980_v0 }
  0x9c   : > { %v828_v29 = vpack.c.bf16 %v346_v27, %v355_v28 }
  0x9e   : > { %829 = vmatpush3.bf16.msra.mxu0 %v828_v29 }
  0x9f   : > { %793 = vmatprep.subr.mxu0 %v986_v4 }
  0xa2   : > { %794 = vmatpush3.msk.msra.mxu0 %vm353_vm3, %v304_v2 }
  0xa3   : > { %796 = vmatmul.mubr.msk.f32.vlgmr.msra.gmra.mrb[0].mxu0 %vm363_vm5, %v356_v30  ;;  %819 = vmatprep.subr.mxu0 %v986_v4 }
  0xa4   : > { %820 = vmatpush3.msk.msra.mxu0 %vm353_vm3, %v348_v16  ;;  %821 = vmatprep.mubr.msk.f32.mxu0 %vm985_vm0, %v986_v4 }
  0xa7   : > { %822 = vmatmul.mubr.msk.f32.vlgmr.msra.gmra.mrb[2].mxu0 %vm597_vm6, %v590_v38 }
  0xa9   : > { %v361_v31 = vpop.permute.xlu0 %360 }
 0x176   : > { %v435_v32 = vpop.f32.mrb[0].mxu0 }
 0x177   : > { %v436_v33 = vadd.f32 %v435_v32, %v361_v31  ;;  %v797_v34 = vpop.f32.mrb[1].mxu0 }
 0x179   : > { %v439_v36 = vmax.f32 %v436_v33, 0.0 }
 0x17a   : > { %v669_v7 = vpop.f32.mrb[2].mxu0 }
 0x17b   : > { %v446_v37 = vmul.f32 %v758_v35, %v439_v36  ;;  %v823_v8 = vpop.f32.mrb[3].mxu0 }
 0x17d   : > { %455 = vrot.lane.b32.xlu0 %v446_v37, %s982_s23  ;;  %448 = vrot.lane.b32.xlu1 %v446_v37, %s981_s22  ;;  %s995_s23 = smov 99  }
 0x181   : > { %462 = vrot.lane.b32.xlu0 %v446_v37, %s990_s21  ;;  %451 = vrot.lane.b32.xlu1 %v446_v37, %s983_s24  ;;  %s996_s24 = smov 117   ;;  %s999_s21 = smov 89  }
 0x185   : > { %470 = vrot.lane.b32.xlu0 %v446_v37, %s988_s26  ;;  %458 = vrot.lane.b32.xlu1 %v446_v37, %s984_s25  ;;  %s997_s25 = smov 91  }
 0x189   : > { %477 = vrot.lane.b32.xlu0 %v446_v37, %s991_s10  ;;  %465 = vrot.lane.b32.xlu1 %v446_v37, %s992_s12  ;;  %s920_s12 = sshll.u32 %s1000_s9, 4  ;;  %s921_s12 = int_to_ptr.vmem [resolvable:$false] %s920_s12 }
 0x18d   : > { %485 = vrot.lane.b32.xlu0 %v446_v37, %s993_s17  ;;  %473 = vrot.lane.b32.xlu1 %v446_v37, %s989_s13  ;;  %s998_s13 = smov 90   ;;  %s922_s17 = scalar_lea.vmem %s921_s12, 256 }
 0x191   : > { %493 = vrot.lane.b32.xlu0 %v446_v37, %s994_s18  ;;  %480 = vrot.lane.b32.xlu1 %v446_v37, %s995_s23  ;;  %s296_s23 = sand.u32 1, %s970_s28  }
 0x192   : > { %s753_s22 = sshll.u32 %s296_s23, 3 }
 0x195   : > { %501 = vrot.lane.b32.xlu0 %v446_v37, %s996_s24  ;;  %488 = vrot.lane.b32.xlu1 %v446_v37, %s997_s25  ;;  %s298_s24 = scalar_lea.vmem [#allocation2], %s753_s22 }
 0x196   : > { %s690_s25 = sshll.u32 %s298_s24, 4  ;;  %s1168_s25 = int_to_ptr.vmem [resolvable:$true] %s690_s25 }
 0x197   : > { %s916_s10 = scalar_lea.vmem %s1168_s25, 128  ;;  %p923_p0 = scmp.lt.s32.totalorder %s1168_s25, %s921_s12 }
 0x198   : > { %p917_p11 = scmp.ne.s32.totalorder %s1168_s25, %s916_s10  ;;  %p924_p1 = scmp.lt.s32.totalorder %s922_s17, %s916_s10 }
 0x199   : > { %513 = vperm.xlu0 %914, %v510_v39   ;;  %496 = vrot.lane.b32.xlu1 %v446_v37, %s998_s13  ;;  %s1166_s13 = scalar_lea.hbm %s1216_s8, %s763_s19 }
 0x19a   : > { %p918_p12 = pnand %p917_p11, %p1084_p5  ;;  %p925_p2 = por %p924_p1, %p923_p0 }
 0x19c   : > { %p919_p13 = pneg %p918_p12 }
 0x19d   : > { %504 = vrot.lane.b32.xlu1 %v446_v37, %s999_s21  ;;  %s677_s21 = scalar_lea.sflag [#allocation3], %s296_s23 }
 0x19e   : > { %p926_p3 = pnand %p925_p2, %p919_p13 }
 0x1a1   : > { %594 = vperm.xlu1 %915, %v591_v40  }
 0x1ef   : > { %v456_v41 = vpop.permute.xlu0 %455  ;;  %v449_v42 = vpop.permute.xlu1 %448 }
 0x1f3   : > { %v463_v43 = vpop.permute.xlu0 %462  ;;  %v452_v44 = vpop.permute.xlu1 %451 }
 0x1f4   : > { %v454_v46 = vsel %vm314_vm1, %v449_v42, %v452_v44 }
 0x1f7   : > { %v459_v45 = vpop.permute.xlu1 %458  ;;  %v471_v48 = vpop.permute.xlu0 %470 }
 0x1f8   : > { %v461_v47 = vsel %vm322_vm2, %v456_v41, %v459_v45 }
 0x1f9   : > { %v831_v49 = vpack.c.bf16 %v461_v47, %v454_v46 }
 0x1fb   : > { %832 = vmatpush3.bf16.msra.mxu1 %v831_v49  ;;  %v466_v50 = vpop.permute.xlu1 %465  ;;  %v478_v51 = vpop.permute.xlu0 %477 }
 0x1fc   : > { %833 = vmatprep.subr.bf16.mxu1 %v980_v0  ;;  %v469_v53 = vsel %vm468_vm7, %v463_v43, %v466_v50 }
 0x1ff   : > { %v474_v52 = vpop.permute.xlu1 %473  ;;  %v486_v58 = vpop.permute.xlu0 %485 }
 0x200   : > { %v476_v54 = vsel %vm345_vm4, %v471_v48, %v474_v52 }
 0x201   : > { %v834_v55 = vpack.c.bf16 %v476_v54, %v469_v53 }
 0x203   : > { %835 = vmatpush3.bf16.msra.mxu1 %v834_v55  ;;  %v481_v56 = vpop.permute.xlu1 %480  ;;  %v494_v61 = vpop.permute.xlu0 %493 }
 0x204   : > { %v484_v57 = vsel %vm483_vm8, %v478_v51, %v481_v56  ;;  %836 = vmatprep.subr.bf16.mxu1 %v980_v0 }
 0x205   : > { %v837_v59 = vpack.c.bf16 %v484_v57, %v446_v37 }
 0x207   : > { %838 = vmatpush3.bf16.msra.mxu1 %v837_v59  ;;  %v489_v60 = vpop.permute.xlu1 %488  ;;  %v502_v5 = vpop.permute.xlu0 %501 }
 0x208   : > { %839 = vmatprep.subr.bf16.mxu1 %v980_v0  ;;  %v492_v63 = vsel %vm491_vm9, %v486_v58, %v489_v60 }
 0x20b   : > { %v497_v62 = vpop.permute.xlu1 %496 }
 0x20c   : > { %v500_v1 = vsel %vm499_vm10, %v494_v61, %v497_v62 }
 0x20d   : > { %v840_v2 = vpack.c.bf16 %v500_v1, %v492_v63 }
 0x20f   : > { %841 = vmatpush3.bf16.msra.mxu1 %v840_v2  ;;  %v505_v3 = vpop.permute.xlu1 %504 }
 0x210   : > { %814 = vmatprep.subr.mxu1 %v986_v4  ;;  %v508_v0 = vsel %vm507_vm11, %v502_v5, %v505_v3 }
 0x213   : > { %815 = vmatpush3.msra.mxu1 %v508_v0 }
 0x214   : > { %817 = vmatmul.mubr.msk.f32.vlgmr.msra.gmra.mrb[0].mxu1 %vm516_vm12, %v509_v6 }
 0x218   : > { %v514_v9 = vpop.permute.xlu0 %513 }
 0x220   : > { %v595_v11 = vpop.permute.xlu1 %594 }
 0x2e7   : > { %v586_v10 = vpop.f32.mrb[0].mxu1 }
 0x2e8   : > { %v587_v12 = vadd.f32 %v586_v10, %v514_v9  ;;  %v818_v4 = vpop.f32.mrb[1].mxu1 }
 0x2ea   : > { %v843_v13 = vadd.f32 %v595_v11, %v587_v12 }
 0x2ec   : > { %v844_v14 = vadd.f32 %v843_v13, %v669_v7 }
 0x2ee   : > { %675 = vst.msk [vmem:[%s298_s24] sm:$0xff] %vm674_vm13, %v844_v14 }
 0x2ef   : > { %929 = shalt.err (!%p926_p3)
}
 0x2f0   : > { %s930_s18 = scalar_lea.hbm %s1166_s13, 128  ;;  %s934_s19 = scalar_lea.hbm %s1216_s8, 256 }
 0x2f1   : > { %p931_p4 = scmp.ne.s32.totalorder %s1166_s13, %s930_s18  ;;  %p935_p9 = scmp.lt.u32.totalorder %s1166_s13, %s1216_s8 }
 0x2f2   : > { %p936_p10 = scmp.lt.u32.totalorder %s934_s19, %s930_s18  ;;  %p938_p12 = scmp.lt.u32.totalorder %s930_s18, %s1166_s13 }
 0x2f3   : > { %p932_p7 = pnand %p931_p4, %p1084_p5 }
 0x2f4   : > { %p937_p11 = por %p936_p10, %p935_p9 }
 0x2f5   : > { %p933_p8 = pneg %p932_p7 }
 0x2f6   : > { %p939_p13 = por %p938_p12, %p937_p11 }
 0x2f8   : > { %p940_p0 = pnand %p939_p13, %p933_p8 }
 0x2fa   : > { %943 = shalt.err (!%p940_p0)
}
 0x2fb   : > { %845 = dma.vmem_to_hbm [thread:$0]  (%p1084_p5), %s1168_s25, 128, %s1166_s13, %s677_s21  }
 0x2fc PF: > { %p851_p1 = scmp.ge.s32.totalorder %s978_s30, 2  ;;  %s702_s20 = sand.u32 1, %s966_s27  }
 0x2fd   : > { %s703_s10 = scalar_lea.sflag [#allocation3], %s702_s20 }
 0x2fe   : > { %p848_p2 = pnand %p851_p1, %p1088_p6 }
 0x300   : > { %961 = dma.done.wait (!%p848_p2), %s703_s10, 128  }
 0x301   : > { %963 = vsyncadd (!%p848_p2), %s703_s10, 4294967168  ;;  %p18_p3 = scmp.ge.s32.totalorder %s1071_s11, 4   ;;  %s1219_s27 = smov %s970_s28 }
 0x302   : > { %s1220_s28 = smov %s974_s29  ;;  %s1221_s29 = smov %s1082_s14 }
 0x303   : > { %s1222_s30 = smov %s1071_s11  ;;  %20 = sbr.rel (!%p18_p3) target bundleno = 3 (0x3), region = 87 }
 0x30a   :  { %708 = vsyncpa [#allocation3], 1 }
 0x30b   :  { %710 = vsyncpa [#allocation3 + $0x1], 1 }

</bundles_post_ra>
